<compile_context>
chip_gen: v5e
topology: v5e:2x2
jax: 0.10.0
libtpu: 0.0.40
codegen_flags: <defaults>
</compile_context>

<pallas_src>
import jax
import jax.numpy as jnp
from jax.experimental import pallas as pl
from jax.experimental.pallas import tpu as pltpu

# ----------------------------------------------------------------------------
# Module configuration (matches MLP.__init__ arguments)
# ----------------------------------------------------------------------------
NET_DEPTH = 4
NET_WIDTH = 32
NET_DEPTH_COND = 2
NET_WIDTH_COND = 16
SKIP_INDEX = 2
NUM_RGB = 3
NUM_DENSITY = 1
ACTIVATION = "relu"          # 'relu' or 'softplus'
XYZ_DIM = 6
VIEW_DIM = 4

NUM_OUT = NUM_RGB + NUM_DENSITY
MAX_SAMPLE_TILE = 1024       # upper bound on samples (rows) per grid step

# With this config the skip-concat never happens after the last trunk layer,
# so density/extra layers always see a width-NET_WIDTH activation (same as the
# PyTorch module, whose density_layer is Linear(net_width, ...)).
assert NET_DEPTH - 1 == 0 or (NET_DEPTH - 1) % SKIP_INDEX != 0


def _round_up(v, m):
    return ((v + m - 1) // m) * m


def _activation(x):
    if ACTIVATION == "relu":
        return jnp.maximum(x, 0.0)
    elif ACTIVATION == "softplus":
        return jax.nn.softplus(x)
    raise NotImplementedError(f"activation {ACTIVATION} not found.")


def _trunk_layer_dims(i):
    if i == 0:
        return XYZ_DIM, NET_WIDTH
    if (i - 1) % SKIP_INDEX == 0 and i > 1:
        return NET_WIDTH + XYZ_DIM, NET_WIDTH
    return NET_WIDTH, NET_WIDTH


def _trunk_layer_has_skip_input(i):
    # Layer i consumes the concat([prev_out, inputs]) produced after layer i-1.
    return (i - 1) % SKIP_INDEX == 0 and i > 1


# ----------------------------------------------------------------------------
# Parameter construction (deterministic xavier-uniform weights, small biases)
# Weights stored as [in_dim, out_dim] (transposed from torch's [out, in]).
# ----------------------------------------------------------------------------
def _xavier(key, fan_in, fan_out):
    bound = jnp.sqrt(6.0 / (fan_in + fan_out))
    return jax.random.uniform(key, (fan_in, fan_out), jnp.float32, -bound, bound)


def init_params(key):
    """Flat list of (weight [in,out] f32, bias [1,out] f32) per linear layer,
    in the order: trunk layers, density, extra, view layers, color."""
    params = []

    def add_linear(k, din, dout):
        kw, kb = jax.random.split(k)
        params.append(_xavier(kw, din, dout))
        params.append(jax.random.uniform(kb, (1, dout), jnp.float32, -0.1, 0.1))

    keys = jax.random.split(key, NET_DEPTH + NET_DEPTH_COND + 3)
    ki = 0

    for i in range(NET_DEPTH):
        din, dout = _trunk_layer_dims(i)
        add_linear(keys[ki], din, dout); ki += 1

    add_linear(keys[ki], NET_WIDTH, NUM_DENSITY); ki += 1        # density head
    add_linear(keys[ki], NET_WIDTH, NET_WIDTH); ki += 1          # extra / bottleneck

    for i in range(NET_DEPTH_COND):
        din = NET_WIDTH + VIEW_DIM if i == 0 else NET_WIDTH_COND
        add_linear(keys[ki], din, NET_WIDTH_COND); ki += 1

    add_linear(keys[ki], NET_WIDTH_COND, NUM_RGB); ki += 1       # color head
    return params


def prepare_kernel_params(params):
    """Split concat-consuming weights into two matmul operands and cast weights
    to bf16 (biases stay f32). Order matches the kernel's consumption order."""
    kp = []
    idx = 0

    # trunk
    for i in range(NET_DEPTH):
        w, b = params[idx], params[idx + 1]; idx += 2
        if _trunk_layer_has_skip_input(i):
            kp.append(w[:NET_WIDTH].astype(jnp.bfloat16))   # acts on prev output
            kp.append(w[NET_WIDTH:].astype(jnp.bfloat16))   # acts on skip inputs
        else:
            kp.append(w.astype(jnp.bfloat16))
        kp.append(b)

    # density head
    w, b = params[idx], params[idx + 1]; idx += 2
    kp += [w.astype(jnp.bfloat16), b]

    # extra (bottleneck)
    w, b = params[idx], params[idx + 1]; idx += 2
    kp += [w.astype(jnp.bfloat16), b]

    # view-conditioned layers
    for j in range(NET_DEPTH_COND):
        w, b = params[idx], params[idx + 1]; idx += 2
        if j == 0:
            kp.append(w[:NET_WIDTH].astype(jnp.bfloat16))   # acts on bottleneck
            kp.append(w[NET_WIDTH:].astype(jnp.bfloat16))   # acts on view dir
        else:
            kp.append(w.astype(jnp.bfloat16))
        kp.append(b)

    # color head
    w, b = params[idx], params[idx + 1]; idx += 2
    kp += [w.astype(jnp.bfloat16), b]
    return kp


# ----------------------------------------------------------------------------
# Pallas kernel: whole MLP fused, one (batch, sample-tile) block per grid step
# ----------------------------------------------------------------------------
def mlp_kernel(*refs):
    x_ref, view_ref = refs[0], refs[1]
    p = refs[2:-1]
    out_ref = refs[-1]

    def dot_bf16(a, w_ref):
        return jnp.dot(a.astype(jnp.bfloat16), w_ref[...],
                       preferred_element_type=jnp.float32)

    inputs = x_ref[...]                               # [ts, XYZ_DIM] f32
    x = inputs
    idx = 0

    # trunk; skip connection folded into a split-weight matmul (no concat)
    for i in range(NET_DEPTH):
        if _trunk_layer_has_skip_input(i):
            pre = dot_bf16(x, p[idx]) + dot_bf16(inputs, p[idx + 1]) + p[idx + 2][...]
            idx += 3
        else:
            pre = dot_bf16(x, p[idx]) + p[idx + 1][...]
            idx += 2
        x = _activation(pre)

    # density head (kept f32, written fused with rgb below)
    density = dot_bf16(x, p[idx]) + p[idx + 1][...]
    idx += 2

    # bottleneck (extra layer, no activation)
    x = dot_bf16(x, p[idx]) + p[idx + 1][...]
    idx += 2

    # view-conditioned layers: view row is selected from the VMEM-resident
    # [B, VIEW_DIM] array; its contribution enters via a split-weight matmul.
    view_row = view_ref[pl.ds(pl.program_id(0), 1), :]          # [1, VIEW_DIM]
    for j in range(NET_DEPTH_COND):
        if j == 0:
            pre = (dot_bf16(x, p[idx]) + dot_bf16(view_row, p[idx + 1])
                   + p[idx + 2][...])
            idx += 3
        else:
            pre = dot_bf16(x, p[idx]) + p[idx + 1][...]
            idx += 2
        x = _activation(pre)

    # color head; fuse rgb + density into a single lane-packed output write
    rgb = dot_bf16(x, p[idx]) + p[idx + 1][...]
    out_ref[...] = jnp.concatenate([rgb, density], axis=-1).astype(out_ref.dtype)


def mlp_forward(x, view_direction, params):
    """x: [batch, num_samples, XYZ_DIM], view_direction: [batch, VIEW_DIM].
    Returns (raw_rgb [B,S,NUM_RGB], raw_density [B,S,NUM_DENSITY])."""
    B, S, feat = x.shape
    assert feat == XYZ_DIM
    assert view_direction.shape == (B, VIEW_DIM)

    ts = min(MAX_SAMPLE_TILE, _round_up(S, 8))        # samples per grid step
    S_pad = _round_up(S, ts)
    if S_pad != S:
        x = jnp.pad(x, ((0, 0), (0, S_pad - S), (0, 0)))

    kparams = prepare_kernel_params(params)

    def full_spec(arr):
        nd = arr.ndim
        return pl.BlockSpec(arr.shape, lambda b, s, _nd=nd: (0,) * _nd)

    in_specs = [
        pl.BlockSpec((None, ts, XYZ_DIM), lambda b, s: (b, s, 0)),   # x tile
        full_spec(view_direction),                                   # resident
    ] + [full_spec(pp) for pp in kparams]

    out_spec = pl.BlockSpec((None, ts, NUM_OUT), lambda b, s: (b, s, 0))
    out_shape = jax.ShapeDtypeStruct((B, S_pad, NUM_OUT), jnp.float32)

    # Advisory cost estimate for XLA's scheduler.
    macs_per_row = 0
    for i in range(NET_DEPTH):
        din, dout = _trunk_layer_dims(i)
        macs_per_row += din * dout
    macs_per_row += NET_WIDTH * NUM_DENSITY
    macs_per_row += NET_WIDTH * NET_WIDTH
    for j in range(NET_DEPTH_COND):
        din = NET_WIDTH + VIEW_DIM if j == 0 else NET_WIDTH_COND
        macs_per_row += din * NET_WIDTH_COND
    macs_per_row += NET_WIDTH_COND * NUM_RGB
    n_rows = B * S_pad
    flops = 2 * n_rows * macs_per_row
    transcendentals = 0
    if ACTIVATION == "softplus":
        transcendentals = n_rows * (NET_DEPTH * NET_WIDTH
                                    + NET_DEPTH_COND * NET_WIDTH_COND)
    param_bytes = sum(pp.size * pp.dtype.itemsize for pp in kparams)
    bytes_accessed = (n_rows * XYZ_DIM * 4 + B * VIEW_DIM * 4
                      + n_rows * NUM_OUT * 4 + param_bytes)

    out = pl.pallas_call(
        mlp_kernel,
        out_shape=out_shape,
        grid_spec=pltpu.PrefetchScalarGridSpec(
            num_scalar_prefetch=0,
            grid=(B, S_pad // ts),
            in_specs=in_specs,
            out_specs=out_spec,
        ),
        compiler_params=pltpu.CompilerParams(
            dimension_semantics=("parallel", "parallel")),
        cost_estimate=pl.CostEstimate(
            flops=flops, transcendentals=transcendentals,
            bytes_accessed=bytes_accessed),
    )(x, view_direction, *kparams)

    rgb = out[:, :S, :NUM_RGB]
    density = out[:, :S, NUM_RGB:]
    return rgb, density


# ----------------------------------------------------------------------------
# Pure-JAX f32 reference (mirrors the PyTorch forward) for a sanity check
# ----------------------------------------------------------------------------
def mlp_reference(x, view_direction, params):
    B, S, _ = x.shape
    inputs = x
    idx = 0
    for i in range(NET_DEPTH):
        x = _activation(x @ params[idx] + params[idx + 1])
        idx += 2
        if i % SKIP_INDEX == 0 and i > 0:
            x = jnp.concatenate([x, inputs], axis=-1)
    raw_density = x @ params[idx] + params[idx + 1]
    idx += 2
    bottleneck = x @ params[idx] + params[idx + 1]
    idx += 2
    vd = jnp.broadcast_to(view_direction[:, None, :], (B, S, VIEW_DIM))
    x = jnp.concatenate([bottleneck, vd], axis=-1)
    for _ in range(NET_DEPTH_COND):
        x = _activation(x @ params[idx] + params[idx + 1])
        idx += 2
    raw_rgb = x @ params[idx] + params[idx + 1]
    return raw_rgb, raw_density


if __name__ == "__main__":
    key = jax.random.PRNGKey(0)
    k_param, k_x, k_view = jax.random.split(key, 3)

    params = init_params(k_param)

    batch, num_samples = 2, 8
    x = jax.random.normal(k_x, (batch, num_samples, XYZ_DIM), jnp.float32)
    view_direction = jax.random.normal(k_view, (batch, VIEW_DIM), jnp.float32)

    rgb, density = mlp_forward(x, view_direction, params)
    jax.block_until_ready((rgb, density))

    rgb_ref, density_ref = mlp_reference(x, view_direction, params)
    assert rgb.shape == (batch, num_samples, NUM_RGB)
    assert density.shape == (batch, num_samples, NUM_DENSITY)
    # Kernel uses bf16 matmul operands with f32 accumulation -> loose tolerance
    # vs the pure-f32 reference; still catches any structural error.
    assert jnp.allclose(rgb, rgb_ref, atol=5e-2, rtol=5e-2)
    assert jnp.allclose(density, density_ref, atol=5e-2, rtol=5e-2)

    print("KERNEL_OK")
</pallas_src>

<mosaic_0001>
module attributes {stable_mosaic.version = 11 : i64} {
  func.func @mlp_kernel(%arg0: i32, %arg1: i32, %arg2: memref<1x8x6xf32, #tpu.memory_space<vmem>>, %arg3: memref<2x4xf32, #tpu.memory_space<vmem>>, %arg4: memref<6x32xbf16, #tpu.memory_space<vmem>>, %arg5: memref<1x32xf32, #tpu.memory_space<vmem>>, %arg6: memref<32x32xbf16, #tpu.memory_space<vmem>>, %arg7: memref<1x32xf32, #tpu.memory_space<vmem>>, %arg8: memref<32x32xbf16, #tpu.memory_space<vmem>>, %arg9: memref<1x32xf32, #tpu.memory_space<vmem>>, %arg10: memref<32x32xbf16, #tpu.memory_space<vmem>>, %arg11: memref<6x32xbf16, #tpu.memory_space<vmem>>, %arg12: memref<1x32xf32, #tpu.memory_space<vmem>>, %arg13: memref<32x1xbf16, #tpu.memory_space<vmem>>, %arg14: memref<1x1xf32, #tpu.memory_space<vmem>>, %arg15: memref<32x32xbf16, #tpu.memory_space<vmem>>, %arg16: memref<1x32xf32, #tpu.memory_space<vmem>>, %arg17: memref<32x16xbf16, #tpu.memory_space<vmem>>, %arg18: memref<4x16xbf16, #tpu.memory_space<vmem>>, %arg19: memref<1x16xf32, #tpu.memory_space<vmem>>, %arg20: memref<16x16xbf16, #tpu.memory_space<vmem>>, %arg21: memref<1x16xf32, #tpu.memory_space<vmem>>, %arg22: memref<16x3xbf16, #tpu.memory_space<vmem>>, %arg23: memref<1x3xf32, #tpu.memory_space<vmem>>, %arg24: memref<1x8x4xf32, #tpu.memory_space<vmem>>) attributes {dimension_semantics = [#tpu.dimension_semantics<parallel>, #tpu.dimension_semantics<parallel>], iteration_bounds = array<i64: 2, 1>, scalar_prefetch = 0 : i64, scratch_operands = 0 : i64, tpu.core_type = #tpu.core_type<tc>, window_params = [{transform_indices = @transform_0, window_bounds = array<i64: 1, 8, 6>}, {pipeline_mode = #tpu.pipeline_mode<synchronous>, transform_indices = @transform_1, window_bounds = array<i64: 2, 4>}, {pipeline_mode = #tpu.pipeline_mode<synchronous>, transform_indices = @transform_2, window_bounds = array<i64: 6, 32>}, {pipeline_mode = #tpu.pipeline_mode<synchronous>, transform_indices = @transform_3, window_bounds = array<i64: 1, 32>}, {pipeline_mode = #tpu.pipeline_mode<synchronous>, transform_indices = @transform_4, window_bounds = array<i64: 32, 32>}, {pipeline_mode = #tpu.pipeline_mode<synchronous>, transform_indices = @transform_5, window_bounds = array<i64: 1, 32>}, {pipeline_mode = #tpu.pipeline_mode<synchronous>, transform_indices = @transform_6, window_bounds = array<i64: 32, 32>}, {pipeline_mode = #tpu.pipeline_mode<synchronous>, transform_indices = @transform_7, window_bounds = array<i64: 1, 32>}, {pipeline_mode = #tpu.pipeline_mode<synchronous>, transform_indices = @transform_8, window_bounds = array<i64: 32, 32>}, {pipeline_mode = #tpu.pipeline_mode<synchronous>, transform_indices = @transform_9, window_bounds = array<i64: 6, 32>}, {pipeline_mode = #tpu.pipeline_mode<synchronous>, transform_indices = @transform_10, window_bounds = array<i64: 1, 32>}, {pipeline_mode = #tpu.pipeline_mode<synchronous>, transform_indices = @transform_11, window_bounds = array<i64: 32, 1>}, {pipeline_mode = #tpu.pipeline_mode<synchronous>, transform_indices = @transform_12, window_bounds = array<i64: 1, 1>}, {pipeline_mode = #tpu.pipeline_mode<synchronous>, transform_indices = @transform_13, window_bounds = array<i64: 32, 32>}, {pipeline_mode = #tpu.pipeline_mode<synchronous>, transform_indices = @transform_14, window_bounds = array<i64: 1, 32>}, {pipeline_mode = #tpu.pipeline_mode<synchronous>, transform_indices = @transform_15, window_bounds = array<i64: 32, 16>}, {pipeline_mode = #tpu.pipeline_mode<synchronous>, transform_indices = @transform_16, window_bounds = array<i64: 4, 16>}, {pipeline_mode = #tpu.pipeline_mode<synchronous>, transform_indices = @transform_17, window_bounds = array<i64: 1, 16>}, {pipeline_mode = #tpu.pipeline_mode<synchronous>, transform_indices = @transform_18, window_bounds = array<i64: 16, 16>}, {pipeline_mode = #tpu.pipeline_mode<synchronous>, transform_indices = @transform_19, window_bounds = array<i64: 1, 16>}, {pipeline_mode = #tpu.pipeline_mode<synchronous>, transform_indices = @transform_20, window_bounds = array<i64: 16, 3>}, {pipeline_mode = #tpu.pipeline_mode<synchronous>, transform_indices = @transform_21, window_bounds = array<i64: 1, 3>}, {transform_indices = @transform_22, window_bounds = array<i64: 1, 8, 4>}]} {
    %c0 = arith.constant 0 : index
    %c0_0 = arith.constant 0 : index
    %c0_1 = arith.constant 0 : index
    %0 = vector.load %arg2[%c0, %c0_0, %c0_1] : memref<1x8x6xf32, #tpu.memory_space<vmem>>, vector<1x8x6xf32>
    %1 = vector.shape_cast %0 : vector<1x8x6xf32> to vector<8x6xf32>
    %2 = arith.truncf %1 : vector<8x6xf32> to vector<8x6xbf16>
    %c0_2 = arith.constant 0 : index
    %c0_3 = arith.constant 0 : index
    %3 = vector.load %arg4[%c0_2, %c0_3] : memref<6x32xbf16, #tpu.memory_space<vmem>>, vector<6x32xbf16>
    %cst = arith.constant dense<0.000000e+00> : vector<8x32xf32>
    %4 = tpu.matmul %2, %3, %cst {dimension_numbers = #tpu.dot_dimension_numbers<[1], [0], [0], [1], [0, 0, 1, 1], [], []>} : vector<8x6xbf16>, vector<6x32xbf16>, vector<8x32xf32> -> vector<8x32xf32>
    %c0_4 = arith.constant 0 : index
    %c0_5 = arith.constant 0 : index
    %5 = vector.load %arg5[%c0_4, %c0_5] : memref<1x32xf32, #tpu.memory_space<vmem>>, vector<1x32xf32>
    %6 = vector.broadcast %5 : vector<1x32xf32> to vector<8x32xf32>
    %7 = arith.addf %4, %6 : vector<8x32xf32>
    %cst_6 = arith.constant 0.000000e+00 : f32
    %8 = vector.broadcast %cst_6 : f32 to vector<8x32xf32>
    %9 = arith.maximumf %7, %8 : vector<8x32xf32>
    %10 = arith.truncf %9 : vector<8x32xf32> to vector<8x32xbf16>
    %c0_7 = arith.constant 0 : index
    %c0_8 = arith.constant 0 : index
    %11 = vector.load %arg6[%c0_7, %c0_8] : memref<32x32xbf16, #tpu.memory_space<vmem>>, vector<32x32xbf16>
    %cst_9 = arith.constant dense<0.000000e+00> : vector<8x32xf32>
    %12 = tpu.matmul %10, %11, %cst_9 {dimension_numbers = #tpu.dot_dimension_numbers<[1], [0], [0], [1], [0, 0, 1, 1], [], []>} : vector<8x32xbf16>, vector<32x32xbf16>, vector<8x32xf32> -> vector<8x32xf32>
    %c0_10 = arith.constant 0 : index
    %c0_11 = arith.constant 0 : index
    %13 = vector.load %arg7[%c0_10, %c0_11] : memref<1x32xf32, #tpu.memory_space<vmem>>, vector<1x32xf32>
    %14 = vector.broadcast %13 : vector<1x32xf32> to vector<8x32xf32>
    %15 = arith.addf %12, %14 : vector<8x32xf32>
    %cst_12 = arith.constant 0.000000e+00 : f32
    %16 = vector.broadcast %cst_12 : f32 to vector<8x32xf32>
    %17 = arith.maximumf %15, %16 : vector<8x32xf32>
    %18 = arith.truncf %17 : vector<8x32xf32> to vector<8x32xbf16>
    %c0_13 = arith.constant 0 : index
    %c0_14 = arith.constant 0 : index
    %19 = vector.load %arg8[%c0_13, %c0_14] : memref<32x32xbf16, #tpu.memory_space<vmem>>, vector<32x32xbf16>
    %cst_15 = arith.constant dense<0.000000e+00> : vector<8x32xf32>
    %20 = tpu.matmul %18, %19, %cst_15 {dimension_numbers = #tpu.dot_dimension_numbers<[1], [0], [0], [1], [0, 0, 1, 1], [], []>} : vector<8x32xbf16>, vector<32x32xbf16>, vector<8x32xf32> -> vector<8x32xf32>
    %c0_16 = arith.constant 0 : index
    %c0_17 = arith.constant 0 : index
    %21 = vector.load %arg9[%c0_16, %c0_17] : memref<1x32xf32, #tpu.memory_space<vmem>>, vector<1x32xf32>
    %22 = vector.broadcast %21 : vector<1x32xf32> to vector<8x32xf32>
    %23 = arith.addf %20, %22 : vector<8x32xf32>
    %cst_18 = arith.constant 0.000000e+00 : f32
    %24 = vector.broadcast %cst_18 : f32 to vector<8x32xf32>
    %25 = arith.maximumf %23, %24 : vector<8x32xf32>
    %26 = arith.truncf %25 : vector<8x32xf32> to vector<8x32xbf16>
    %c0_19 = arith.constant 0 : index
    %c0_20 = arith.constant 0 : index
    %27 = vector.load %arg10[%c0_19, %c0_20] : memref<32x32xbf16, #tpu.memory_space<vmem>>, vector<32x32xbf16>
    %cst_21 = arith.constant dense<0.000000e+00> : vector<8x32xf32>
    %28 = tpu.matmul %26, %27, %cst_21 {dimension_numbers = #tpu.dot_dimension_numbers<[1], [0], [0], [1], [0, 0, 1, 1], [], []>} : vector<8x32xbf16>, vector<32x32xbf16>, vector<8x32xf32> -> vector<8x32xf32>
    %29 = arith.truncf %1 : vector<8x6xf32> to vector<8x6xbf16>
    %c0_22 = arith.constant 0 : index
    %c0_23 = arith.constant 0 : index
    %30 = vector.load %arg11[%c0_22, %c0_23] : memref<6x32xbf16, #tpu.memory_space<vmem>>, vector<6x32xbf16>
    %cst_24 = arith.constant dense<0.000000e+00> : vector<8x32xf32>
    %31 = tpu.matmul %29, %30, %cst_24 {dimension_numbers = #tpu.dot_dimension_numbers<[1], [0], [0], [1], [0, 0, 1, 1], [], []>} : vector<8x6xbf16>, vector<6x32xbf16>, vector<8x32xf32> -> vector<8x32xf32>
    %32 = arith.addf %28, %31 : vector<8x32xf32>
    %c0_25 = arith.constant 0 : index
    %c0_26 = arith.constant 0 : index
    %33 = vector.load %arg12[%c0_25, %c0_26] : memref<1x32xf32, #tpu.memory_space<vmem>>, vector<1x32xf32>
    %34 = vector.broadcast %33 : vector<1x32xf32> to vector<8x32xf32>
    %35 = arith.addf %32, %34 : vector<8x32xf32>
    %cst_27 = arith.constant 0.000000e+00 : f32
    %36 = vector.broadcast %cst_27 : f32 to vector<8x32xf32>
    %37 = arith.maximumf %35, %36 : vector<8x32xf32>
    %38 = arith.truncf %37 : vector<8x32xf32> to vector<8x32xbf16>
    %c0_28 = arith.constant 0 : index
    %c0_29 = arith.constant 0 : index
    %39 = vector.load %arg13[%c0_28, %c0_29] : memref<32x1xbf16, #tpu.memory_space<vmem>>, vector<32x1xbf16>
    %cst_30 = arith.constant dense<0.000000e+00> : vector<8x1xf32>
    %40 = tpu.matmul %38, %39, %cst_30 {dimension_numbers = #tpu.dot_dimension_numbers<[1], [0], [0], [1], [0, 0, 1, 1], [], []>} : vector<8x32xbf16>, vector<32x1xbf16>, vector<8x1xf32> -> vector<8x1xf32>
    %c0_31 = arith.constant 0 : index
    %c0_32 = arith.constant 0 : index
    %41 = vector.load %arg14[%c0_31, %c0_32] : memref<1x1xf32, #tpu.memory_space<vmem>>, vector<1x1xf32>
    %42 = vector.broadcast %41 : vector<1x1xf32> to vector<8x1xf32>
    %43 = arith.addf %40, %42 : vector<8x1xf32>
    %44 = arith.truncf %37 : vector<8x32xf32> to vector<8x32xbf16>
    %c0_33 = arith.constant 0 : index
    %c0_34 = arith.constant 0 : index
    %45 = vector.load %arg15[%c0_33, %c0_34] : memref<32x32xbf16, #tpu.memory_space<vmem>>, vector<32x32xbf16>
    %cst_35 = arith.constant dense<0.000000e+00> : vector<8x32xf32>
    %46 = tpu.matmul %44, %45, %cst_35 {dimension_numbers = #tpu.dot_dimension_numbers<[1], [0], [0], [1], [0, 0, 1, 1], [], []>} : vector<8x32xbf16>, vector<32x32xbf16>, vector<8x32xf32> -> vector<8x32xf32>
    %c0_36 = arith.constant 0 : index
    %c0_37 = arith.constant 0 : index
    %47 = vector.load %arg16[%c0_36, %c0_37] : memref<1x32xf32, #tpu.memory_space<vmem>>, vector<1x32xf32>
    %48 = vector.broadcast %47 : vector<1x32xf32> to vector<8x32xf32>
    %49 = arith.addf %46, %48 : vector<8x32xf32>
    %50 = arith.index_cast %arg0 : i32 to index
    %c0_38 = arith.constant 0 : index
    %51 = vector.load %arg3[%50, %c0_38] : memref<2x4xf32, #tpu.memory_space<vmem>>, vector<1x4xf32>
    %52 = arith.truncf %49 : vector<8x32xf32> to vector<8x32xbf16>
    %c0_39 = arith.constant 0 : index
    %c0_40 = arith.constant 0 : index
    %53 = vector.load %arg17[%c0_39, %c0_40] : memref<32x16xbf16, #tpu.memory_space<vmem>>, vector<32x16xbf16>
    %cst_41 = arith.constant dense<0.000000e+00> : vector<8x16xf32>
    %54 = tpu.matmul %52, %53, %cst_41 {dimension_numbers = #tpu.dot_dimension_numbers<[1], [0], [0], [1], [0, 0, 1, 1], [], []>} : vector<8x32xbf16>, vector<32x16xbf16>, vector<8x16xf32> -> vector<8x16xf32>
    %55 = arith.truncf %51 : vector<1x4xf32> to vector<1x4xbf16>
    %c0_42 = arith.constant 0 : index
    %c0_43 = arith.constant 0 : index
    %56 = vector.load %arg18[%c0_42, %c0_43] : memref<4x16xbf16, #tpu.memory_space<vmem>>, vector<4x16xbf16>
    %cst_44 = arith.constant dense<0.000000e+00> : vector<1x16xf32>
    %57 = tpu.matmul %55, %56, %cst_44 {dimension_numbers = #tpu.dot_dimension_numbers<[1], [0], [0], [1], [0, 0, 1, 1], [], []>} : vector<1x4xbf16>, vector<4x16xbf16>, vector<1x16xf32> -> vector<1x16xf32>
    %58 = vector.broadcast %57 : vector<1x16xf32> to vector<8x16xf32>
    %59 = arith.addf %54, %58 : vector<8x16xf32>
    %c0_45 = arith.constant 0 : index
    %c0_46 = arith.constant 0 : index
    %60 = vector.load %arg19[%c0_45, %c0_46] : memref<1x16xf32, #tpu.memory_space<vmem>>, vector<1x16xf32>
    %61 = vector.broadcast %60 : vector<1x16xf32> to vector<8x16xf32>
    %62 = arith.addf %59, %61 : vector<8x16xf32>
    %cst_47 = arith.constant 0.000000e+00 : f32
    %63 = vector.broadcast %cst_47 : f32 to vector<8x16xf32>
    %64 = arith.maximumf %62, %63 : vector<8x16xf32>
    %65 = arith.truncf %64 : vector<8x16xf32> to vector<8x16xbf16>
    %c0_48 = arith.constant 0 : index
    %c0_49 = arith.constant 0 : index
    %66 = vector.load %arg20[%c0_48, %c0_49] : memref<16x16xbf16, #tpu.memory_space<vmem>>, vector<16x16xbf16>
    %cst_50 = arith.constant dense<0.000000e+00> : vector<8x16xf32>
    %67 = tpu.matmul %65, %66, %cst_50 {dimension_numbers = #tpu.dot_dimension_numbers<[1], [0], [0], [1], [0, 0, 1, 1], [], []>} : vector<8x16xbf16>, vector<16x16xbf16>, vector<8x16xf32> -> vector<8x16xf32>
    %c0_51 = arith.constant 0 : index
    %c0_52 = arith.constant 0 : index
    %68 = vector.load %arg21[%c0_51, %c0_52] : memref<1x16xf32, #tpu.memory_space<vmem>>, vector<1x16xf32>
    %69 = vector.broadcast %68 : vector<1x16xf32> to vector<8x16xf32>
    %70 = arith.addf %67, %69 : vector<8x16xf32>
    %cst_53 = arith.constant 0.000000e+00 : f32
    %71 = vector.broadcast %cst_53 : f32 to vector<8x16xf32>
    %72 = arith.maximumf %70, %71 : vector<8x16xf32>
    %73 = arith.truncf %72 : vector<8x16xf32> to vector<8x16xbf16>
    %c0_54 = arith.constant 0 : index
    %c0_55 = arith.constant 0 : index
    %74 = vector.load %arg22[%c0_54, %c0_55] : memref<16x3xbf16, #tpu.memory_space<vmem>>, vector<16x3xbf16>
    %cst_56 = arith.constant dense<0.000000e+00> : vector<8x3xf32>
    %75 = tpu.matmul %73, %74, %cst_56 {dimension_numbers = #tpu.dot_dimension_numbers<[1], [0], [0], [1], [0, 0, 1, 1], [], []>} : vector<8x16xbf16>, vector<16x3xbf16>, vector<8x3xf32> -> vector<8x3xf32>
    %c0_57 = arith.constant 0 : index
    %c0_58 = arith.constant 0 : index
    %76 = vector.load %arg23[%c0_57, %c0_58] : memref<1x3xf32, #tpu.memory_space<vmem>>, vector<1x3xf32>
    %77 = vector.broadcast %76 : vector<1x3xf32> to vector<8x3xf32>
    %78 = arith.addf %75, %77 : vector<8x3xf32>
    %79 = tpu.concatenate %78, %43 in 1 : vector<8x3xf32>, vector<8x1xf32> -> vector<8x4xf32>
    %c0_59 = arith.constant 0 : index
    %c0_60 = arith.constant 0 : index
    %c0_61 = arith.constant 0 : index
    %80 = vector.load %arg24[%c0_59, %c0_60, %c0_61] : memref<1x8x4xf32, #tpu.memory_space<vmem>>, vector<1x8x4xf32>
    %81 = vector.shape_cast %80 : vector<1x8x4xf32> to vector<8x4xf32>
    %82 = vector.shape_cast %79 : vector<8x4xf32> to vector<1x8x4xf32>
    tpu.vector_store %arg24[%c0_59, %c0_60, %c0_61], %82 {strides = array<i32>} : memref<1x8x4xf32, #tpu.memory_space<vmem>>, vector<1x8x4xf32>,
    return
  }
  func.func @transform_0(%arg0: i32, %arg1: i32) -> (i32, i32, i32) {
    %c0_i32 = arith.constant 0 : i32
    %c0_i32_0 = arith.constant 0 : i32
    return %arg0, %arg1, %c0_i32 : i32, i32, i32
  }
  func.func @transform_1(%arg0: i32, %arg1: i32) -> (i32, i32) {
    %c0_i32 = arith.constant 0 : i32
    %c0_i32_0 = arith.constant 0 : i32
    %c0_i32_1 = arith.constant 0 : i32
    return %c0_i32, %c0_i32_0 : i32, i32
  }
  func.func @transform_2(%arg0: i32, %arg1: i32) -> (i32, i32) {
    %c0_i32 = arith.constant 0 : i32
    %c0_i32_0 = arith.constant 0 : i32
    %c0_i32_1 = arith.constant 0 : i32
    return %c0_i32, %c0_i32_0 : i32, i32
  }
  func.func @transform_3(%arg0: i32, %arg1: i32) -> (i32, i32) {
    %c0_i32 = arith.constant 0 : i32
    %c0_i32_0 = arith.constant 0 : i32
    %c0_i32_1 = arith.constant 0 : i32
    return %c0_i32, %c0_i32_0 : i32, i32
  }
  func.func @transform_4(%arg0: i32, %arg1: i32) -> (i32, i32) {
    %c0_i32 = arith.constant 0 : i32
    %c0_i32_0 = arith.constant 0 : i32
    %c0_i32_1 = arith.constant 0 : i32
    return %c0_i32, %c0_i32_0 : i32, i32
  }
  func.func @transform_5(%arg0: i32, %arg1: i32) -> (i32, i32) {
    %c0_i32 = arith.constant 0 : i32
    %c0_i32_0 = arith.constant 0 : i32
    %c0_i32_1 = arith.constant 0 : i32
    return %c0_i32, %c0_i32_0 : i32, i32
  }
  func.func @transform_6(%arg0: i32, %arg1: i32) -> (i32, i32) {
    %c0_i32 = arith.constant 0 : i32
    %c0_i32_0 = arith.constant 0 : i32
    %c0_i32_1 = arith.constant 0 : i32
    return %c0_i32, %c0_i32_0 : i32, i32
  }
  func.func @transform_7(%arg0: i32, %arg1: i32) -> (i32, i32) {
    %c0_i32 = arith.constant 0 : i32
    %c0_i32_0 = arith.constant 0 : i32
    %c0_i32_1 = arith.constant 0 : i32
    return %c0_i32, %c0_i32_0 : i32, i32
  }
  func.func @transform_8(%arg0: i32, %arg1: i32) -> (i32, i32) {
    %c0_i32 = arith.constant 0 : i32
    %c0_i32_0 = arith.constant 0 : i32
    %c0_i32_1 = arith.constant 0 : i32
    return %c0_i32, %c0_i32_0 : i32, i32
  }
  func.func @transform_9(%arg0: i32, %arg1: i32) -> (i32, i32) {
    %c0_i32 = arith.constant 0 : i32
    %c0_i32_0 = arith.constant 0 : i32
    %c0_i32_1 = arith.constant 0 : i32
    return %c0_i32, %c0_i32_0 : i32, i32
  }
  func.func @transform_10(%arg0: i32, %arg1: i32) -> (i32, i32) {
    %c0_i32 = arith.constant 0 : i32
    %c0_i32_0 = arith.constant 0 : i32
    %c0_i32_1 = arith.constant 0 : i32
    return %c0_i32, %c0_i32_0 : i32, i32
  }
  func.func @transform_11(%arg0: i32, %arg1: i32) -> (i32, i32) {
    %c0_i32 = arith.constant 0 : i32
    %c0_i32_0 = arith.constant 0 : i32
    %c0_i32_1 = arith.constant 0 : i32
    return %c0_i32, %c0_i32_0 : i32, i32
  }
  func.func @transform_12(%arg0: i32, %arg1: i32) -> (i32, i32) {
    %c0_i32 = arith.constant 0 : i32
    %c0_i32_0 = arith.constant 0 : i32
    %c0_i32_1 = arith.constant 0 : i32
    return %c0_i32, %c0_i32_0 : i32, i32
  }
  func.func @transform_13(%arg0: i32, %arg1: i32) -> (i32, i32) {
    %c0_i32 = arith.constant 0 : i32
    %c0_i32_0 = arith.constant 0 : i32
    %c0_i32_1 = arith.constant 0 : i32
    return %c0_i32, %c0_i32_0 : i32, i32
  }
  func.func @transform_14(%arg0: i32, %arg1: i32) -> (i32, i32) {
    %c0_i32 = arith.constant 0 : i32
    %c0_i32_0 = arith.constant 0 : i32
    %c0_i32_1 = arith.constant 0 : i32
    return %c0_i32, %c0_i32_0 : i32, i32
  }
  func.func @transform_15(%arg0: i32, %arg1: i32) -> (i32, i32) {
    %c0_i32 = arith.constant 0 : i32
    %c0_i32_0 = arith.constant 0 : i32
    %c0_i32_1 = arith.constant 0 : i32
    return %c0_i32, %c0_i32_0 : i32, i32
  }
  func.func @transform_16(%arg0: i32, %arg1: i32) -> (i32, i32) {
    %c0_i32 = arith.constant 0 : i32
    %c0_i32_0 = arith.constant 0 : i32
    %c0_i32_1 = arith.constant 0 : i32
    return %c0_i32, %c0_i32_0 : i32, i32
  }
  func.func @transform_17(%arg0: i32, %arg1: i32) -> (i32, i32) {
    %c0_i32 = arith.constant 0 : i32
    %c0_i32_0 = arith.constant 0 : i32
    %c0_i32_1 = arith.constant 0 : i32
    return %c0_i32, %c0_i32_0 : i32, i32
  }
  func.func @transform_18(%arg0: i32, %arg1: i32) -> (i32, i32) {
    %c0_i32 = arith.constant 0 : i32
    %c0_i32_0 = arith.constant 0 : i32
    %c0_i32_1 = arith.constant 0 : i32
    return %c0_i32, %c0_i32_0 : i32, i32
  }
  func.func @transform_19(%arg0: i32, %arg1: i32) -> (i32, i32) {
    %c0_i32 = arith.constant 0 : i32
    %c0_i32_0 = arith.constant 0 : i32
    %c0_i32_1 = arith.constant 0 : i32
    return %c0_i32, %c0_i32_0 : i32, i32
  }
  func.func @transform_20(%arg0: i32, %arg1: i32) -> (i32, i32) {
    %c0_i32 = arith.constant 0 : i32
    %c0_i32_0 = arith.constant 0 : i32
    %c0_i32_1 = arith.constant 0 : i32
    return %c0_i32, %c0_i32_0 : i32, i32
  }
  func.func @transform_21(%arg0: i32, %arg1: i32) -> (i32, i32) {
    %c0_i32 = arith.constant 0 : i32
    %c0_i32_0 = arith.constant 0 : i32
    %c0_i32_1 = arith.constant 0 : i32
    return %c0_i32, %c0_i32_0 : i32, i32
  }
  func.func @transform_22(%arg0: i32, %arg1: i32) -> (i32, i32, i32) {
    %c0_i32 = arith.constant 0 : i32
    %c0_i32_0 = arith.constant 0 : i32
    return %arg0, %arg1, %c0_i32 : i32, i32, i32
  }
}

</mosaic_0001>

<bundles_post_ra>
// kernel: tpu_custom_call.1
= control target key start
LH: loop header
LB: loop body
LE: loop exit
PB: predicated region body
PF: predicated region fallthrough
CT: control target
= control target key end

     0   :  { %s2177_s0 = inlined_call_operand.vmem [shape: f32[2,8,6], index: 0, kind: input, shape index: {}]   ;;  %s2178_s1 = inlined_call_operand.hbm [shape: f32[2,4], index: 1, kind: input, shape index: {}]   ;;  %s2179_s2 = inlined_call_operand.vmem [shape: bf16[6,32], index: 2, kind: input, shape index: {}]   ;;  %s2180_s3 = inlined_call_operand.hbm [shape: f32[1,32], index: 3, kind: input, shape index: {}]   ;;  %s2181_s4 = inlined_call_operand.vmem [shape: bf16[32,32], index: 4, kind: input, shape index: {}]   ;;  %s2182_s5 = inlined_call_operand.hbm [shape: f32[1,32], index: 5, kind: input, shape index: {}]   ;;  %s2183_s6 = inlined_call_operand.vmem [shape: bf16[32,32], index: 6, kind: input, shape index: {}]   ;;  %s2184_s7 = inlined_call_operand.hbm [shape: f32[1,32], index: 7, kind: input, shape index: {}]   ;;  %s2185_s8 = inlined_call_operand.vmem [shape: bf16[32,32], index: 8, kind: input, shape index: {}]   ;;  %s2186_s9 = inlined_call_operand.hbm [shape: bf16[6,32], index: 9, kind: input, shape index: {}]   ;;  %s2187_s10 = inlined_call_operand.hbm [shape: f32[1,32], index: 10, kind: input, shape index: {}]   ;;  %s2188_s11 = inlined_call_operand.vmem [shape: bf16[32,1], index: 11, kind: input, shape index: {}]   ;;  %s2189_s12 = inlined_call_operand.<no memory space> [shape: f32[1,1], index: 12, kind: input, shape index: {}]   ;;  %s2190_s13 = inlined_call_operand.vmem [shape: bf16[32,32], index: 13, kind: input, shape index: {}]   ;;  %s2191_s14 = inlined_call_operand.hbm [shape: f32[1,32], index: 14, kind: input, shape index: {}]   ;;  %s2192_s15 = inlined_call_operand.vmem [shape: bf16[32,16], index: 15, kind: input, shape index: {}]   ;;  %s2193_s16 = inlined_call_operand.vmem [shape: bf16[4,16], index: 16, kind: input, shape index: {}]   ;;  %s2194_s17 = inlined_call_operand.vmem [shape: f32[1,16], index: 17, kind: input, shape index: {}]   ;;  %s2195_s18 = inlined_call_operand.hbm [shape: bf16[16,16], index: 18, kind: input, shape index: {}]   ;;  %s2196_s19 = inlined_call_operand.vmem [shape: f32[1,16], index: 19, kind: input, shape index: {}]   ;;  %s2197_s20 = inlined_call_operand.vmem [shape: bf16[16,3], index: 20, kind: input, shape index: {}]   ;;  %s2198_s21 = inlined_call_operand.vmem [shape: f32[1,3], index: 21, kind: input, shape index: {}]   ;;  %s2199_s22 = inlined_call_operand.vmem [shape: f32[2,8,4], index: 22, kind: output, shape index: {}]  }
   0x1   :  { %2203 = sst [smem:[#allocation22_spill]] %s2177_s0  ;;  %v27_v0 = vstv %s2189_s12 }
   0x2   :  { %2204 = sst [smem:[#allocation23_spill]] %s2178_s1  ;;  %28 = vst [vmem:[#allocation2] sm:$0x1] %v27_v0 }
   0x3   :  { %2205 = sst [smem:[#allocation24_spill]] %s2179_s2 }
   0x4   :  { %2206 = sst [smem:[#allocation25_spill]] %s2180_s3 }
   0x5   :  { %2207 = sst [smem:[#allocation26_spill]] %s2181_s4 }
   0x6   :  { %2208 = sst [smem:[#allocation27_spill]] %s2182_s5 }
   0x7   :  { %2209 = sst [smem:[#allocation28_spill]] %s2183_s6 }
   0x8   :  { %2210 = sst [smem:[#allocation29_spill]] %s2184_s7 }
   0x9   :  { %2211 = sst [smem:[#allocation30_spill]] %s2187_s10 }
   0xa   :  { %2212 = sst [smem:[#allocation31_spill]] %s2198_s21 }
   0xb   :  { %2213 = sst [smem:[#allocation32_spill]] %s2199_s22 }
   0xc   :  { %29 = vsyncpa [#allocation4], 0 }
   0xd   :  { %30 = vsyncpa [#allocation6], 0 }
   0xe   :  { %31 = vsyncpa [#allocation9], 0 }
   0xf   :  { %32 = vsyncpa [#allocation12], 0 }
  0x10   :  { %33 = vsyncpa [#allocation15], 0  ;;  %s1987_s29 = smov 0   ;;  %s1989_s30 = smov 0  }
  0x11   :  { %s1991_s4 = smov 0  }
  0x12 LB: > { %2214 = sst [smem:[#allocation21_spill]] %s1856_s4  ;;  %s1351_s5 = sadd.s32 4294967295, %s1856_s4   ;;  %s1856_s4 = sphi %s1991_s4, %s39_s4   ;;  %s1852_s30 = sphi %s1989_s30, %s2231_s30   ;;  %s1848_s29 = sphi %s1987_s29, %s2230_s29  }
  0x13   : > { %s2215_s23 = sld [smem:[#allocation25_spill]]  ;;  %p1353_p0 = scmp.ge.s32.totalorder %s1856_s4, 1 }
  0x14   : > { %p553_p1 = scmp.lt.s32.totalorder %s1856_s4, 3  ;;  %p2008_p2 = scmp.eq.s32.totalorder %s1351_s5, 0 }
  0x15   : > { %s1858_s25 = smov [#allocation5]   ;;  %s2218_s7 = sld [smem:[#allocation29_spill]] }
  0x16   : > { %p2012_p3 = pnand %p1353_p0, %p553_p1  ;;  %s582_s26 = sshll.u32 %s1858_s25, 4  ;;  %s583_s26 = int_to_ptr.vmem [resolvable:$true] %s582_s26 }
  0x17   : > { %s2219_s10 = sld [smem:[#allocation30_spill]]  ;;  %s1859_s5 = smov [#allocation8]  }
  0x18   : > { %p1489_p4 = pneg %p2012_p3  ;;  %s612_s25 = sshll.u32 %s1859_s5, 4  ;;  %s613_s25 = int_to_ptr.vmem [resolvable:$true] %s612_s25 }
  0x19   : > { %s580_s1 = sshll.u32 %s2215_s23, 4  ;;  %s1860_s2 = smov [#allocation11]   ;;  %s581_s1 = int_to_ptr.hbm [resolvable:$true] %s580_s1 }
  0x1a   : > { %p2026_p5 = pnand %p2008_p2, %p1489_p4  ;;  %s639_s27 = sshll.u32 %s1860_s2, 4  ;;  %s640_s27 = int_to_ptr.vmem [resolvable:$true] %s639_s27 }
  0x1b   : > { %s610_s3 = sshll.u32 %s2218_s7, 4  ;;  %s51_s28 = sadd.s32 1, %s1852_s30  ;;  %s611_s3 = int_to_ptr.hbm [resolvable:$true] %s610_s3 }
  0x1c   : > { %1495 = dma.hbm_to_vmem [thread:$0]  (!%p2026_p5), %s581_s1, 16, %s583_s26, [#allocation6]  }
  0x1d   : > { %s637_s0 = sshll.u32 %s2219_s10, 4  ;;  %s2221_s10 = sld [smem:[#allocation23_spill]]  ;;  %s638_s0 = int_to_ptr.hbm [resolvable:$true] %s637_s0 }
  0x1e   : > { %1501 = dma.hbm_to_vmem [thread:$0]  (!%p2026_p5), %s611_s3, 16, %s613_s25, [#allocation9]  }
  0x1f   : > { %1507 = dma.hbm_to_vmem [thread:$0]  (!%p2026_p5), %s638_s0, 16, %s640_s27, [#allocation12]  }
  0x20   : > { %p53_p6 = scmp.ge.s32.totalorder %s51_s28, 2  ;;  %s2222_s21 = sld [smem:[#allocation27_spill]] }
  0x21   : > { %s1861_s26 = smov [#allocation3]   ;;  %s1862_s0 = smov [#allocation7]  }
  0x22   : > { %s2233_s28 = smov (%p53_p6, %s51_s28), 0  ;;  %s567_s3 = sshll.u32 %s1861_s26, 4  ;;  %s568_s3 = int_to_ptr.vmem [resolvable:$true] %s567_s3 }
  0x23   : > { %s565_s4 = sshll.u32 %s2221_s10, 4  ;;  %s597_s25 = sshll.u32 %s1862_s0, 4  ;;  %s566_s4 = int_to_ptr.hbm [resolvable:$true] %s565_s4  ;;  %s598_s25 = int_to_ptr.vmem [resolvable:$true] %s597_s25 }
  0x24   : > { %1492 = dma.hbm_to_vmem [thread:$0]  (!%p2026_p5), %s566_s4, 32, %s568_s3, [#allocation4]  }
  0x25   : > { %s625_s10 = sshll.u32 %s2186_s9, 4  ;;  %s658_s27 = sshll.u32 %s2191_s14, 4  ;;  %s626_s10 = int_to_ptr.hbm [resolvable:$true] %s625_s10  ;;  %s659_s27 = int_to_ptr.hbm [resolvable:$true] %s658_s27 }
  0x26   : > { %s595_s1 = sshll.u32 %s2222_s21, 4  ;;  %s1863_s12 = smov [#allocation10]   ;;  %s596_s1 = int_to_ptr.hbm [resolvable:$true] %s595_s1 }
  0x27   : > { %1498 = dma.hbm_to_vmem [thread:$0]  (!%p2026_p5), %s596_s1, 16, %s598_s25, [#allocation6]  }
  0x28   : > { %s627_s5 = sshll.u32 %s1863_s12, 4  ;;  %s1864_s4 = smov [#allocation13]   ;;  %s628_s5 = int_to_ptr.vmem [resolvable:$true] %s627_s5 }
  0x29   : > { %1504 = dma.hbm_to_vmem [thread:$0]  (!%p2026_p5), %s626_s10, 64, %s628_s5, [#allocation9]  }
  0x2a   : > { %s660_s26 = sshll.u32 %s1864_s4, 4  ;;  %s678_s7 = sshll.u32 %s2195_s18, 4  ;;  %s661_s26 = int_to_ptr.vmem [resolvable:$true] %s660_s26  ;;  %s679_s7 = int_to_ptr.hbm [resolvable:$true] %s678_s7 }
  0x2b   : > { %1510 = dma.hbm_to_vmem [thread:$0]  (!%p2026_p5), %s659_s27, 16, %s661_s26, [#allocation12]  }
  0x2c   : > { %s1865_s1 = smov [#allocation14]   ;;  %s1866_s2 = smov 64  }
  0x2d   : > { %s680_s25 = sshll.u32 %s1865_s1, 4  ;;  %s1867_s21 = smov 4   ;;  %s681_s25 = int_to_ptr.vmem [resolvable:$true] %s680_s25 }
  0x2e   : > { %1513 = dma.hbm_to_vmem [thread:$0]  (!%p2026_p5), %s679_s7, 128, %s681_s25, [#allocation15], %s1866_s2, %s1866_s2, %s1867_s21  }
  0x2f   : > { %715 = sbr.rel (%p2012_p3) target bundleno = 1145 (0x479), region = 108 }
  0x34   : > { %1827 = dma.done.wait (%p2008_p2), [#allocation4], 32  }
  0x35   : > { %1829 = vsyncadd (%p2008_p2), [#allocation4], 4294967264 }
  0x36   : > { %1831 = dma.done.wait (%p2008_p2), [#allocation6], 32  }
  0x37   : > { %1833 = vsyncadd (%p2008_p2), [#allocation6], 4294967264 }
  0x38   : > { %1835 = dma.done.wait (%p2008_p2), [#allocation9], 80  }
  0x39   : > { %1837 = vsyncadd (%p2008_p2), [#allocation9], 4294967216 }
  0x3a   : > { %1839 = dma.done.wait (%p2008_p2), [#allocation12], 32  }
  0x3b   : > { %1841 = vsyncadd (%p2008_p2), [#allocation12], 4294967264 }
  0x3c   : > { %1843 = dma.done.wait (%p2008_p2), [#allocation15], 128  }
  0x3d   : > { %1845 = vsyncadd (%p2008_p2), [#allocation15], 4294967168  ;;  %p817_p7 = scmp.lt.s32.totalorder %s1848_s29, 1  ;;  %vm843_vm0 = vcmask 1042432   ;;  %s2223_s27 = sld [smem:[#allocation22_spill]]  ;;  %vm839_vm1 = vcmask 48128  }
  0x3e   : > { %s2224_s26 = sld [smem:[#allocation24_spill]]  ;;  %v1565_v7 = vld [vmem:[#allocation5] ss:$0 sm:$0xff]  ;;  %vm882_vm2 = vcmask 261120   ;;  %v943_v15 = vld [vmem:[#allocation10] sm:$0x7] }
  0x3f   : > { %s2088_s6 = scalar_select %p817_p7, %s1848_s29, 1  ;;  %v1448_v16 = vld [vmem:[%s2185_s8 + $0x8] sm:$0xff]  ;;  %v945_v17 = vsel %vm843_vm0, %v943_v15, 0  ;;  %v1447_v18 = vld [vmem:[%s2185_s8] sm:$0xff]  ;;  %vm1077_vm3 = vcmask 1041408   ;;  %vm1073_vm4 = vcmask 31744  }
  0x40   : > { %s2225_s0 = sld [smem:[#allocation26_spill]]  ;;  %954 = vmatpush.bf16.msra.mxu3 %v945_v17  ;;  %v1566_v19 = vld [vmem:[#allocation7] ss:$0 sm:$0xff]  ;;  %v1452_v26 = vld [vmem:[%s2190_s13 + $0x8] sm:$0xff]  ;;  %v1567_v28 = vld [vmem:[#allocation8] ss:$0 sm:$0xff] }
  0x41   : > { %s1372_s23 = sshll.u32 %s2088_s6, 3  ;;  %s2226_s21 = sld [smem:[#allocation28_spill]]  ;;  %v1450_v34 = vld [vmem:[%s2188_s11 + $0x8] sm:$0xff]  ;;  %v1451_v35 = vld [vmem:[%s2190_s13] sm:$0xff]  ;;  %v1455_v51 = vld [vmem:[#allocation14] sm:$0xff]  ;;  %vm1142_vm5 = vcmask 130048  }
  0x42   : > { %v1449_v36 = vld [vmem:[%s2188_s11] sm:$0xff]  ;;  %v1454_v41 = vld [vmem:[%s2192_s15 + $0x8] sm:$0xff]  ;;  %vm1193_vm6 = vcmask 23552  }
  0x43   : > { %s823_s12 = scalar_lea.vmem %s2223_s27, %s1372_s23  ;;  %v1072_v37 = vld [vmem:[%s2193_s16] sm:$0x3]  ;;  %v1568_v43 = vld [vmem:[#allocation11] ss:$0 sm:$0xff]  ;;  %v1569_v53 = vld [vmem:[#allocation13] ss:$0 sm:$0xff] }
  0x44   : > { %v834_v1 = vld [vmem:[%s2224_s26] sm:$0x7]  ;;  %1024 = vmatpush.bf16.msrb.mxu3 %v1450_v34  ;;  %v1079_v39 = vsel %vm1077_vm3, %v1072_v37, 0  ;;  %s2228_s26 = sld [smem:[#allocation32_spill]] }
  0x45   : > { %v832_v2 = vld [vmem:[%s823_s12] sm:$0xff]  ;;  %v845_v3 = vsel %vm843_vm0, %v834_v1, 0  ;;  %s1064_s12 = scalar_lea.vmem [#allocation3], %s1848_s29  ;;  %s1868_s29 = smov 3  }
  0x46   : > { %v833_v4 = vpack.c.bf16 %v832_v2, %v832_v2  ;;  %854 = vmatpush.bf16.msra.mxu0 %v845_v3  ;;  %v1444_v5 = vld [vmem:[%s2225_s0 + $0x8] sm:$0xff]  ;;  %v1443_v6 = vld [vmem:[%s2225_s0] sm:$0xff] }
  0x47   : > { %892 = vmatpush.bf16.msra.mxu1 %v1444_v5  ;;  %v1446_v13 = vld [vmem:[%s2226_s21 + $0x8] sm:$0xff]  ;;  %v1445_v14 = vld [vmem:[%s2226_s21] sm:$0xff] }
  0x48   : > { %930 = vmatpush.bf16.msra.mxu2 %v1446_v13  ;;  %1393 = vmatmul.msk.bf16.vlgmr.msra.gmra.mxu3 %vm839_vm1, %v833_v4  ;;  %v1065_v38 = vld [vmem:[%s1064_s12] sm:$0x1]  ;;  %s2227_s12 = sld [smem:[#allocation31_spill]] }
  0x49   : > { %1374 = vmatmul.msk.bf16.vlgmr.msra.gmra.mxu0 %vm839_vm1, %v833_v4  ;;  %1025 = vmatpush.bf16.msrb.mxu3 %v1449_v36  ;;  %v1071_v40 = vpack.c.bf16 %v1065_v38, %v1065_v38  ;;  %v1453_v42 = vld [vmem:[%s2192_s15] sm:$0xff] }
  0x4a   : > { %981 = vmatpush.bf16.msrb.mxu0 %v1448_v16  ;;  %v1570_v57 = vld [vmem:[#allocation2] ss:$0 sm:$0xff]  ;;  %s830_s24 = scalar_lea.vmem %s2228_s26, %s1372_s23 }
  0x4b   : > { %893 = vmatpush.bf16.msra.mxu1 %v1443_v6  ;;  %v1456_v62 = vld [vmem:[%s2197_s20] sm:$0xff] }
  0x4c   : > { %931 = vmatpush.bf16.msra.mxu2 %v1445_v14  ;;  %v1571_v0 = vld [vmem:[%s2194_s17] ss:$0 sm:$0xff] }
  0x4d   : > { %1153 = vmatpush.bf16.msra.mxu3 %v1455_v51 }
  0x4e   : > { %982 = vmatpush.bf16.msrb.mxu0 %v1447_v18  ;;  %v1573_v13 = vld [vmem:[%s2227_s12] ss:$0 sm:$0xff] }
  0x4f   : > { %1057 = vmatpush.bf16.msrb.mxu1 %v1452_v26 }
  0x50   : > { %1088 = vmatpush.bf16.msrb.mxu2 %v1079_v39 }
  0x52   : > { %1116 = vmatpush.bf16.msra.mxu0 %v1454_v41 }
  0x53   : > { %1058 = vmatpush.bf16.msrb.mxu1 %v1451_v35 }
  0x56   : > { %1117 = vmatpush.bf16.msra.mxu0 %v1453_v42 }
  0xc6   : > { %v856_v8 = vpop.f32.mrf.mxu0 }
  0xc7   : > { %v857_v9 = vadd.f32 %v1565_v7, %v856_v8  ;;  %v1572_v7 = vld [vmem:[%s2196_s19] ss:$0 sm:$0xff] }
  0xc9   : > { %v860_v10 = vmax.f32 %v857_v9, 0.0 }
  0xcb   : > { %v861_v11 = vpack.c.bf16 %v860_v10, %v860_v10  ;;  %v956_v25 = vpop.f32.mrf.mxu3 }
  0xcd   : > { %1383 = vmatmul.msk.bf16.vlgmr.msra.gmra.mxu1 %vm882_vm2, %v861_v11 }
  0xce   : > { %v858_v12 = vpop.f32.mrf.mxu0  ;;  %1183 = vmatpush.bf16.msra.mxu1 %v1456_v62 }
  0xd3   : > { %v958_v27 = vpop.f32.mrf.mxu3 }
 0x14a   : > { %v895_v20 = vpop.f32.mrf.mxu1 }
 0x14b   : > { %v896_v21 = vadd.f32 %v1566_v19, %v895_v20 }
 0x14d   : > { %v899_v22 = vmax.f32 %v896_v21, 0.0 }
 0x14f   : > { %v900_v23 = vpack.c.bf16 %v899_v22, %v899_v22 }
 0x151   : > { %1392 = vmatmul.msk.bf16.vlgmr.msra.gmra.mxu2 %vm882_vm2, %v900_v23 }
 0x152   : > { %v897_v24 = vpop.f32.mrf.mxu1 }
 0x161   : > { %1421 = vmatmul.msk.bf16.vlgmr.msrb.gmra.mxu2 %vm1073_vm4, %v1071_v40 }
 0x1d4   : > { %v933_v29 = vpop.f32.mrf.mxu2 }
 0x1d5   : > { %v934_v30 = vadd.f32 %v1567_v28, %v933_v29 }
 0x1d7   : > { %v937_v31 = vmax.f32 %v934_v30, 0.0 }
 0x1d9   : > { %v938_v32 = vpack.c.bf16 %v937_v31, %v937_v31 }
 0x1db   : > { %1402 = vmatmul.msk.bf16.vlgmr.msrb.gmra.mxu0 %vm882_vm2, %v938_v32 }
 0x1dc   : > { %v935_v33 = vpop.f32.mrf.mxu2 }
 0x1e4   : > { %v1090_v50 = vpop.f32.mrf.mxu2 }
 0x1e5   : > { %v1094_v63 = vperm.slane %v1090_v50, 0 }
 0x1ec   : > { %v1092_v52 = vpop.f32.mrf.mxu2 }
 0x258   : > { %v984_v44 = vpop.f32.mrf.mxu0 }
 0x259   : > { %v985_v45 = vadd.f32 %v984_v44, %v956_v25 }
 0x25b   : > { %v992_v46 = vadd.f32 %v1568_v43, %v985_v45 }
 0x25d   : > { %v993_v47 = vmax.f32 %v992_v46, 0.0 }
 0x25f   : > { %v994_v48 = vpack.c.bf16 %v993_v47, %v993_v47 }
 0x260   : > { %v986_v49 = vpop.f32.mrf.mxu0 }
 0x261   : > { %1411 = vmatmul.msk.bf16.vlgmr.msrb.gmra.mxu3 %vm882_vm2, %v994_v48  ;;  %1420 = vmatmul.msk.bf16.vlgmr.msrb.gmra.mxu1 %vm882_vm2, %v994_v48 }
 0x2de   : > { %v1060_v54 = vpop.f32.mrf.mxu1 }
 0x2df   : > { %v1061_v55 = vadd.f32 %v1569_v53, %v1060_v54 }
 0x2e1   : > { %v1066_v56 = vpack.c.bf16 %v1061_v55, %v1061_v55 }
 0x2e3   : > { %1430 = vmatmul.msk.bf16.vlgmr.msra.gmra.mxu0 %vm882_vm2, %v1066_v56 }
 0x2e4   : > { %v1027_v58 = vpop.f32.mrf.mxu3 }
 0x2e5   : > { %v1028_v59 = vadd.f32 %v1570_v57, %v1027_v58 }
 0x2e6   : > { %v1062_v60 = vpop.f32.mrf.mxu1 }
 0x2e7   : > { %1190 = vrot.lane.b32.xlu0 %v1028_v59, %s1868_s29 }
 0x2ec   : > { %v1029_v61 = vpop.f32.mrf.mxu3 }
 0x359   : > { %v1191_v16 = vpop.permute.xlu0 %1190 }
 0x360   : > { %v1119_v1 = vpop.f32.mrf.mxu0 }
 0x361   : > { %v1120_v2 = vadd.f32 %v1119_v1, %v1094_v63 }
 0x363   : > { %v1127_v3 = vadd.f32 %v1571_v0, %v1120_v2 }
 0x365   : > { %v1128_v4 = vmax.f32 %v1127_v3, 0.0 }
 0x367   : > { %v1129_v5 = vpack.c.bf16 %v1128_v4, %v1128_v4 }
 0x368   : > { %v1121_v6 = vpop.f32.mrf.mxu0 }
 0x369   : > { %1435 = vmatmul.msk.bf16.vlgmr.msra.gmra.mxu3 %vm1142_vm5, %v1129_v5 }
 0x3ec   : > { %v1155_v8 = vpop.f32.mrf.mxu3 }
 0x3ed   : > { %v1156_v9 = vadd.f32 %v1572_v7, %v1155_v8 }
 0x3ef   : > { %v1159_v10 = vmax.f32 %v1156_v9, 0.0 }
 0x3f1   : > { %v1160_v11 = vpack.c.bf16 %v1159_v10, %v1159_v10 }
 0x3f3   : > { %1440 = vmatmul.msk.bf16.vlgmr.msra.gmra.mxu1 %vm1142_vm5, %v1160_v11 }
 0x3f4   : > { %v1157_v12 = vpop.f32.mrf.mxu3 }
 0x470   : > { %v1185_v14 = vpop.f32.mrf.mxu1 }
 0x471   : > { %v1186_v15 = vadd.f32 %v1573_v13, %v1185_v14 }
 0x473   : > { %v1194_v17 = vsel %vm1193_vm6, %v1186_v15, %v1191_v16 }
 0x474   : > { %1195 = vst.msk [vmem:[%s830_s24] sm:$0xff] %vm1073_vm4, %v1194_v17 }
 0x478   : > { %v1187_v18 = vpop.f32.mrf.mxu1 }
 0x479 PF: > { %s2229_s29 = sld [smem:[#allocation21_spill]] }
 0x47f   : > { %s39_s4 = sadd.s32 1, %s2229_s29   ;;  %s2230_s29 = smov %s1852_s30 }
 0x480   : > { %p36_p8 = scmp.ge.s32.totalorder %s39_s4, 4   ;;  %s2231_s30 = smov %s2233_s28 }
 0x482   :  { %38 = sbr.rel (!%p36_p8) target bundleno = 18 (0x12), region = 172 }
 0x487   :  { %1221 = vsyncpa [#allocation4], 1 }
 0x488   :  { %1223 = vsyncpa [#allocation4 + $0x1], 1 }
 0x489   :  { %1224 = vsyncpa [#allocation6], 1 }
 0x48a   :  { %1225 = vsyncpa [#allocation9], 1 }
 0x48b   :  { %1226 = vsyncpa [#allocation12], 1 }
 0x48c   :  { %1227 = vsyncpa [#allocation15], 1 }

</bundles_post_ra>
